<compile_context>
chip_gen: v6e
topology: v6e:2x2x1
jax: 0.10.0
libtpu: 0.0.40
codegen_flags: <defaults>
</compile_context>

<pallas_src>
import functools
from typing import Dict, List, Tuple

import numpy as np

import jax
import jax.numpy as jnp
from jax.experimental import pallas as pl
from jax.experimental.pallas import tpu as pltpu


def _round_up(x: int, m: int) -> int:
    return ((x + m - 1) // m) * m


# ----------------------------------------------------------------------------
# Fused kernel, one (F-tile, factor-type) grid point:
#   X[i, a*D:(a+1)*D] = input_states[idx[t, a, f*tf + i]]     (in-kernel gather)
#   H   = relu(X @ W1[t] + b1[t])                              (one K=A*D matmul)
#   out = H @ W2[t] + b2[t]
# ----------------------------------------------------------------------------
def _fused_factor_kernel(idx_ref, arity_ref, states_ref,
                         w1_ref, b1_ref, w2_ref, b2_ref,
                         o_ref, x_ref, *, max_arity, f_pad):
    f = pl.program_id(0)                 # which F tile
    t = pl.program_id(1)                 # which factor type
    tf, k = x_ref.shape                  # (F tile rows, max_arity * state_dim)
    d = k // max_arity
    arity_t = arity_ref[t]               # SMEM scalar: real arity of this type
    base = t * max_arity * f_pad + f * tf

    # ---- gather rows of `states` into the X scratch (row copies, no matmul) ----
    for a in range(max_arity):           # static unroll over arity slots
        col = a * d

        def gather(a=a, col=col):
            # Static destination row (unrolled), dynamic source row from SMEM index.
            for i in range(tf):
                node = idx_ref[base + a * f_pad + i]
                x_ref[pl.ds(i, 1), pl.ds(col, d)] = states_ref[pl.ds(node, 1), :]

        def zero_cols(col=col):
            # Padded arity slot: zero the columns (matches zero-padded W1 rows).
            x_ref[:, pl.ds(col, d)] = jnp.zeros((tf, d), jnp.float32)

        if a == 0:
            gather()                     # every active factor type has arity >= 1
        else:
            pl.when(a < arity_t)(gather)
            pl.when(a >= arity_t)(zero_cols)

    # ---- 2-layer MLP on the MXU (weights pre-cast; biases/ReLU in f32) ----
    x = x_ref[...].astype(w1_ref.dtype)
    h = jnp.dot(x, w1_ref[0], preferred_element_type=jnp.float32)
    h = jnp.maximum(h + b1_ref[0], 0.0)
    out = jnp.dot(h.astype(w2_ref.dtype), w2_ref[0],
                  preferred_element_type=jnp.float32) + b2_ref[0]
    o_ref[0] = out.astype(o_ref.dtype)


@functools.partial(jax.jit, static_argnames=("max_arity", "f_tile"))
def _fused_forward(idx, arity, states, w1, b1, w2, b2, *, max_arity, f_tile):
    T, K, H_pad = w1.shape
    O_pad = w2.shape[2]
    N, D = states.shape
    F_pad = idx.shape[0] // (T * max_arity)
    assert K == max_arity * D and F_pad % f_tile == 0
    num_f_tiles = F_pad // f_tile

    kernel = functools.partial(_fused_factor_kernel,
                               max_arity=max_arity, f_pad=F_pad)

    flops = 2 * T * F_pad * (K * H_pad + H_pad * O_pad)
    bytes_accessed = (sum(int(a.size) * a.dtype.itemsize
                          for a in (idx, arity, states, w1, b1, w2, b2))
                      + T * F_pad * O_pad * 4)

    return pl.pallas_call(
        kernel,
        out_shape=jax.ShapeDtypeStruct((T, F_pad, O_pad), jnp.float32),
        grid_spec=pltpu.PrefetchScalarGridSpec(
            num_scalar_prefetch=2,                       # idx, arity -> SMEM
            grid=(num_f_tiles, T),
            in_specs=[
                # node states: resident in VMEM across all grid steps
                pl.BlockSpec((N, D), lambda f, t, *_: (0, 0)),
                # per-type stacked MLP params (W pre-cast to mxu dtype)
                pl.BlockSpec((1, K, H_pad), lambda f, t, *_: (t, 0, 0)),
                pl.BlockSpec((1, 1, H_pad), lambda f, t, *_: (t, 0, 0)),
                pl.BlockSpec((1, H_pad, O_pad), lambda f, t, *_: (t, 0, 0)),
                pl.BlockSpec((1, 1, O_pad), lambda f, t, *_: (t, 0, 0)),
            ],
            out_specs=pl.BlockSpec((1, f_tile, O_pad),
                                   lambda f, t, *_: (t, f, 0)),
            scratch_shapes=[pltpu.VMEM((f_tile, K), jnp.float32)],
        ),
        compiler_params=pltpu.CompilerParams(
            # F tiles shard across TensorCores; factor-type axis is sequential.
            dimension_semantics=("parallel", "arbitrary"),
            vmem_limit_bytes=32 * 1024 * 1024,
        ),
        cost_estimate=pl.CostEstimate(flops=flops, transcendentals=0,
                                      bytes_accessed=bytes_accessed),
    )(idx, arity, states, w1, b1, w2, b2)


# ----------------------------------------------------------------------------
# FactorGraphCpp equivalent
# ----------------------------------------------------------------------------
class FactorGraphCppJax:
    """JAX/Pallas port of FactorGraphCpp.

    factor_models are (w1, b1, w2, b2) parameter tuples of a 2-layer ReLU MLP
    factor model; each model consumes the concatenation of its per-position
    gathered node states.
    """

    def __init__(self,
                 factor_dependencies: Dict[str, List[Tuple[int, ...]]],
                 factor_models: Dict[str, tuple],
                 mxu_dtype=jnp.float32,
                 f_tile_max: int = 128):
        self.factor_dependencies = factor_dependencies
        self.factor_models = factor_models
        self.mxu_dtype = mxu_dtype

        # Same index bookkeeping as the PyTorch module.
        self.factor_label_indices: Dict[str, list] = {}
        for factor_type, dependencies in factor_dependencies.items():
            if len(dependencies) == 0:
                self.factor_label_indices[factor_type] = []
                continue
            idx_lists = [[] for _ in range(len(dependencies[0]))]
            for nodes in dependencies:
                for i, node in enumerate(nodes):
                    idx_lists[i].append(int(node))
            self.factor_label_indices[factor_type] = idx_lists

        self.active_types = [ft for ft in factor_models
                             if self.factor_label_indices.get(ft)]
        if not self.active_types:
            return

        self.arity = {ft: len(self.factor_label_indices[ft])
                      for ft in self.active_types}
        self.num_factors = {ft: len(self.factor_label_indices[ft][0])
                            for ft in self.active_types}
        self.max_arity = max(self.arity.values())

        hidden_dims, out_dims, state_dims = {}, {}, {}
        for ft in self.active_types:
            w1, b1, w2, b2 = factor_models[ft]
            d_in = int(w1.shape[0])
            assert d_in % self.arity[ft] == 0
            state_dims[ft] = d_in // self.arity[ft]
            hidden_dims[ft] = int(w1.shape[1])
            out_dims[ft] = int(w2.shape[1])
        assert len(set(state_dims.values())) == 1, "all factor types share state_dim"
        self.state_dim = next(iter(state_dims.values()))
        self.out_dims = out_dims

        # Padded geometry: F tile rows to the packed-sublane multiple of
        # mxu_dtype (8 for f32, 16 for bf16); H / O to 128 lanes.
        pack = 8 * (4 // np.dtype(mxu_dtype).itemsize)
        max_f = max(self.num_factors.values())
        self.f_tile = min(_round_up(max_f, pack), _round_up(f_tile_max, pack))
        self.F_pad = _round_up(max_f, self.f_tile)
        self.H_pad = _round_up(max(hidden_dims.values()), 128)
        self.O_pad = _round_up(max(out_dims.values()), 128)

        T, A, D = len(self.active_types), self.max_arity, self.state_dim

        # Zero-pad + stack per-type weights once; pre-cast matmul operands to
        # mxu_dtype (biases stay f32, added on the f32 accumulator).
        w1s = np.zeros((T, A * D, self.H_pad), np.float32)
        b1s = np.zeros((T, 1, self.H_pad), np.float32)
        w2s = np.zeros((T, self.H_pad, self.O_pad), np.float32)
        b2s = np.zeros((T, 1, self.O_pad), np.float32)
        for t, ft in enumerate(self.active_types):
            w1, b1, w2, b2 = (np.asarray(p, np.float32) for p in factor_models[ft])
            w1s[t, :w1.shape[0], :w1.shape[1]] = w1
            b1s[t, 0, :b1.size] = b1.reshape(-1)
            w2s[t, :w2.shape[0], :w2.shape[1]] = w2
            b2s[t, 0, :b2.size] = b2.reshape(-1)
        self._w1 = jnp.asarray(w1s).astype(mxu_dtype)
        self._w2 = jnp.asarray(w2s).astype(mxu_dtype)
        self._b1 = jnp.asarray(b1s)
        self._b2 = jnp.asarray(b2s)

        # int32 gather indices, flat layout [(t*A + a)*F_pad + f]; padding -> 0.
        idxs = np.zeros((T, A, self.F_pad), np.int32)
        for t, ft in enumerate(self.active_types):
            for a, lst in enumerate(self.factor_label_indices[ft]):
                idxs[t, a, :len(lst)] = np.asarray(lst, np.int32)
        self._idx = jnp.asarray(idxs.reshape(-1))
        self._arity = jnp.asarray(np.array([self.arity[ft] for ft in self.active_types],
                                           np.int32))

    def __call__(self, input_states: jax.Array) -> Dict[str, jax.Array]:
        """input_states: [num_label_nodes, state_dim] -> {factor_type: [num_factors, out_dim]}"""
        if not self.active_types:
            return {}
        n, d = input_states.shape
        assert d == self.state_dim
        # TODO(synk): for very large node tables, keep `input_states` in HBM
        # (memory_space=pl.ANY) and DMA-gather rows instead of holding it in VMEM.
        slab = _fused_forward(self._idx, self._arity,
                              input_states.astype(jnp.float32),
                              self._w1, self._b1, self._w2, self._b2,
                              max_arity=self.max_arity,
                              f_tile=self.f_tile)            # [T, F_pad, O_pad]
        return {ft: slab[t, :self.num_factors[ft], :self.out_dims[ft]]
                for t, ft in enumerate(self.active_types)}


# ----------------------------------------------------------------------------
# Deterministic parameter construction + pure-JAX reference
# ----------------------------------------------------------------------------
def make_mlp_params(key, d_in, hidden, d_out):
    k1, k2, k3, k4 = jax.random.split(key, 4)
    w1 = 0.1 * jax.random.normal(k1, (d_in, hidden), dtype=jnp.float32)
    b1 = 0.1 * jax.random.normal(k2, (1, hidden), dtype=jnp.float32)
    w2 = 0.1 * jax.random.normal(k3, (hidden, d_out), dtype=jnp.float32)
    b2 = 0.1 * jax.random.normal(k4, (1, d_out), dtype=jnp.float32)
    return (w1, b1, w2, b2)


def mlp_reference(x, w1, b1, w2, b2):
    h = jnp.maximum(x @ w1 + b1, 0.0)
    return h @ w2 + b2


if __name__ == "__main__":
    num_nodes = 8
    state_dim = 32
    hidden = 32
    out_dim = 4

    key = jax.random.PRNGKey(0)
    k_states, k_unary, k_pair = jax.random.split(key, 3)

    input_states = jax.random.normal(k_states, (num_nodes, state_dim),
                                     dtype=jnp.float32)

    factor_dependencies = {
        "unary": [(i,) for i in range(num_nodes)],               # arity 1, 8 factors
        "pairwise": [(i, i + 1) for i in range(num_nodes - 2)],  # arity 2, 6 factors
        "empty": [],                                             # skipped branch
    }
    factor_models = {
        "unary": make_mlp_params(k_unary, state_dim, hidden, out_dim),
        "pairwise": make_mlp_params(k_pair, 2 * state_dim, hidden, out_dim),
        "empty": make_mlp_params(jax.random.PRNGKey(1), state_dim, hidden, out_dim),
    }

    def reference_values(graph):
        ref = {}
        for ft, params in factor_models.items():
            indices = graph.factor_label_indices[ft]
            if not indices:
                continue
            states = [jnp.take(input_states, jnp.asarray(lst, jnp.int32), axis=0)
                      for lst in indices]
            x = jnp.concatenate(states, axis=-1)
            ref[ft] = mlp_reference(x, *params)
        return ref

    # --- f32 MXU path (matches the PyTorch module's f32 semantics) ---
    graph = FactorGraphCppJax(factor_dependencies, factor_models)
    factor_values = graph(input_states)
    jax.block_until_ready(factor_values)

    refs = reference_values(graph)
    assert set(factor_values.keys()) == set(refs.keys())
    assert "empty" not in factor_values
    for ft, ref in refs.items():
        got = factor_values[ft]
        assert got.shape == ref.shape, (ft, got.shape, ref.shape)
        assert jnp.allclose(got, ref, atol=1e-4, rtol=1e-4), ft

    # --- bf16-MXU variant (recommended perf setting on v5e/v6e/v7x at scale) ---
    graph_bf16 = FactorGraphCppJax(factor_dependencies, factor_models,
                                   mxu_dtype=jnp.bfloat16)
    fv_bf16 = graph_bf16(input_states)
    jax.block_until_ready(fv_bf16)
    for ft, ref in refs.items():
        assert fv_bf16[ft].shape == ref.shape, ft
        assert jnp.allclose(fv_bf16[ft], ref, atol=3e-2, rtol=3e-2), ft

    print("KERNEL_OK")
</pallas_src>

<mosaic_0001>
module attributes {stable_mosaic.version = 11 : i64} {
  func.func @_fused_factor_kernel(%arg0: i32, %arg1: i32, %arg2: memref<32xi32, #tpu.memory_space<smem>>, %arg3: memref<2xi32, #tpu.memory_space<smem>>, %arg4: memref<8x32xf32, #tpu.memory_space<vmem>>, %arg5: memref<1x64x128xf32, #tpu.memory_space<vmem>>, %arg6: memref<1x1x128xf32, #tpu.memory_space<vmem>>, %arg7: memref<1x128x128xf32, #tpu.memory_space<vmem>>, %arg8: memref<1x1x128xf32, #tpu.memory_space<vmem>>, %arg9: memref<1x8x128xf32, #tpu.memory_space<vmem>>, %arg10: memref<8x64xf32, #tpu.memory_space<vmem>>) attributes {dimension_semantics = [#tpu.dimension_semantics<parallel>, #tpu.dimension_semantics<arbitrary>], iteration_bounds = array<i64: 1, 2>, scalar_prefetch = 2 : i64, scratch_operands = 1 : i64, tpu.core_type = #tpu.core_type<tc>, window_params = [{pipeline_mode = #tpu.pipeline_mode<synchronous>, transform_indices = @transform_0, window_bounds = array<i64: 8, 32>}, {transform_indices = @transform_1, window_bounds = array<i64: 1, 64, 128>}, {transform_indices = @transform_2, window_bounds = array<i64: 1, 1, 128>}, {transform_indices = @transform_3, window_bounds = array<i64: 1, 128, 128>}, {transform_indices = @transform_4, window_bounds = array<i64: 1, 1, 128>}, {transform_indices = @transform_5, window_bounds = array<i64: 1, 8, 128>}]} {
    %0 = arith.index_cast %arg1 : i32 to index
    %1 = memref.load %arg3[%0] : memref<2xi32, #tpu.memory_space<smem>>
    %c2_i32 = arith.constant 2 : i32
    %2 = arith.muli %arg1, %c2_i32 : i32
    %c8_i32 = arith.constant 8 : i32
    %3 = arith.muli %2, %c8_i32 : i32
    %c8_i32_0 = arith.constant 8 : i32
    %4 = arith.muli %arg0, %c8_i32_0 : i32
    %5 = arith.addi %3, %4 : i32
    %c0_i32 = arith.constant 0 : i32
    %6 = arith.addi %5, %c0_i32 : i32
    %c0_i32_1 = arith.constant 0 : i32
    %7 = arith.addi %6, %c0_i32_1 : i32
    %8 = arith.index_cast %7 : i32 to index
    %9 = memref.load %arg2[%8] : memref<32xi32, #tpu.memory_space<smem>>
    %10 = arith.index_cast %9 : i32 to index
    %c0 = arith.constant 0 : index
    %11 = vector.load %arg4[%10, %c0] : memref<8x32xf32, #tpu.memory_space<vmem>>, vector<1x32xf32>
    %c0_2 = arith.constant 0 : index
    %c0_3 = arith.constant 0 : index
    %12 = vector.load %arg10[%c0_2, %c0_3] : memref<8x64xf32, #tpu.memory_space<vmem>>, vector<1x32xf32>
    tpu.vector_store %arg10[%c0_2, %c0_3], %11 {strides = array<i32>} : memref<8x64xf32, #tpu.memory_space<vmem>>, vector<1x32xf32>,
    %c0_i32_4 = arith.constant 0 : i32
    %13 = arith.addi %5, %c0_i32_4 : i32
    %c1_i32 = arith.constant 1 : i32
    %14 = arith.addi %13, %c1_i32 : i32
    %15 = arith.index_cast %14 : i32 to index
    %16 = memref.load %arg2[%15] : memref<32xi32, #tpu.memory_space<smem>>
    %17 = arith.index_cast %16 : i32 to index
    %c0_5 = arith.constant 0 : index
    %18 = vector.load %arg4[%17, %c0_5] : memref<8x32xf32, #tpu.memory_space<vmem>>, vector<1x32xf32>
    %c1 = arith.constant 1 : index
    %c0_6 = arith.constant 0 : index
    %19 = vector.load %arg10[%c1, %c0_6] : memref<8x64xf32, #tpu.memory_space<vmem>>, vector<1x32xf32>
    tpu.vector_store %arg10[%c1, %c0_6], %18 {strides = array<i32>} : memref<8x64xf32, #tpu.memory_space<vmem>>, vector<1x32xf32>,
    %c0_i32_7 = arith.constant 0 : i32
    %20 = arith.addi %5, %c0_i32_7 : i32
    %c2_i32_8 = arith.constant 2 : i32
    %21 = arith.addi %20, %c2_i32_8 : i32
    %22 = arith.index_cast %21 : i32 to index
    %23 = memref.load %arg2[%22] : memref<32xi32, #tpu.memory_space<smem>>
    %24 = arith.index_cast %23 : i32 to index
    %c0_9 = arith.constant 0 : index
    %25 = vector.load %arg4[%24, %c0_9] : memref<8x32xf32, #tpu.memory_space<vmem>>, vector<1x32xf32>
    %c2 = arith.constant 2 : index
    %c0_10 = arith.constant 0 : index
    %26 = vector.load %arg10[%c2, %c0_10] : memref<8x64xf32, #tpu.memory_space<vmem>>, vector<1x32xf32>
    tpu.vector_store %arg10[%c2, %c0_10], %25 {strides = array<i32>} : memref<8x64xf32, #tpu.memory_space<vmem>>, vector<1x32xf32>,
    %c0_i32_11 = arith.constant 0 : i32
    %27 = arith.addi %5, %c0_i32_11 : i32
    %c3_i32 = arith.constant 3 : i32
    %28 = arith.addi %27, %c3_i32 : i32
    %29 = arith.index_cast %28 : i32 to index
    %30 = memref.load %arg2[%29] : memref<32xi32, #tpu.memory_space<smem>>
    %31 = arith.index_cast %30 : i32 to index
    %c0_12 = arith.constant 0 : index
    %32 = vector.load %arg4[%31, %c0_12] : memref<8x32xf32, #tpu.memory_space<vmem>>, vector<1x32xf32>
    %c3 = arith.constant 3 : index
    %c0_13 = arith.constant 0 : index
    %33 = vector.load %arg10[%c3, %c0_13] : memref<8x64xf32, #tpu.memory_space<vmem>>, vector<1x32xf32>
    tpu.vector_store %arg10[%c3, %c0_13], %32 {strides = array<i32>} : memref<8x64xf32, #tpu.memory_space<vmem>>, vector<1x32xf32>,
    %c0_i32_14 = arith.constant 0 : i32
    %34 = arith.addi %5, %c0_i32_14 : i32
    %c4_i32 = arith.constant 4 : i32
    %35 = arith.addi %34, %c4_i32 : i32
    %36 = arith.index_cast %35 : i32 to index
    %37 = memref.load %arg2[%36] : memref<32xi32, #tpu.memory_space<smem>>
    %38 = arith.index_cast %37 : i32 to index
    %c0_15 = arith.constant 0 : index
    %39 = vector.load %arg4[%38, %c0_15] : memref<8x32xf32, #tpu.memory_space<vmem>>, vector<1x32xf32>
    %c4 = arith.constant 4 : index
    %c0_16 = arith.constant 0 : index
    %40 = vector.load %arg10[%c4, %c0_16] : memref<8x64xf32, #tpu.memory_space<vmem>>, vector<1x32xf32>
    tpu.vector_store %arg10[%c4, %c0_16], %39 {strides = array<i32>} : memref<8x64xf32, #tpu.memory_space<vmem>>, vector<1x32xf32>,
    %c0_i32_17 = arith.constant 0 : i32
    %41 = arith.addi %5, %c0_i32_17 : i32
    %c5_i32 = arith.constant 5 : i32
    %42 = arith.addi %41, %c5_i32 : i32
    %43 = arith.index_cast %42 : i32 to index
    %44 = memref.load %arg2[%43] : memref<32xi32, #tpu.memory_space<smem>>
    %45 = arith.index_cast %44 : i32 to index
    %c0_18 = arith.constant 0 : index
    %46 = vector.load %arg4[%45, %c0_18] : memref<8x32xf32, #tpu.memory_space<vmem>>, vector<1x32xf32>
    %c5 = arith.constant 5 : index
    %c0_19 = arith.constant 0 : index
    %47 = vector.load %arg10[%c5, %c0_19] : memref<8x64xf32, #tpu.memory_space<vmem>>, vector<1x32xf32>
    tpu.vector_store %arg10[%c5, %c0_19], %46 {strides = array<i32>} : memref<8x64xf32, #tpu.memory_space<vmem>>, vector<1x32xf32>,
    %c0_i32_20 = arith.constant 0 : i32
    %48 = arith.addi %5, %c0_i32_20 : i32
    %c6_i32 = arith.constant 6 : i32
    %49 = arith.addi %48, %c6_i32 : i32
    %50 = arith.index_cast %49 : i32 to index
    %51 = memref.load %arg2[%50] : memref<32xi32, #tpu.memory_space<smem>>
    %52 = arith.index_cast %51 : i32 to index
    %c0_21 = arith.constant 0 : index
    %53 = vector.load %arg4[%52, %c0_21] : memref<8x32xf32, #tpu.memory_space<vmem>>, vector<1x32xf32>
    %c6 = arith.constant 6 : index
    %c0_22 = arith.constant 0 : index
    %54 = vector.load %arg10[%c6, %c0_22] : memref<8x64xf32, #tpu.memory_space<vmem>>, vector<1x32xf32>
    tpu.vector_store %arg10[%c6, %c0_22], %53 {strides = array<i32>} : memref<8x64xf32, #tpu.memory_space<vmem>>, vector<1x32xf32>,
    %c0_i32_23 = arith.constant 0 : i32
    %55 = arith.addi %5, %c0_i32_23 : i32
    %c7_i32 = arith.constant 7 : i32
    %56 = arith.addi %55, %c7_i32 : i32
    %57 = arith.index_cast %56 : i32 to index
    %58 = memref.load %arg2[%57] : memref<32xi32, #tpu.memory_space<smem>>
    %59 = arith.index_cast %58 : i32 to index
    %c0_24 = arith.constant 0 : index
    %60 = vector.load %arg4[%59, %c0_24] : memref<8x32xf32, #tpu.memory_space<vmem>>, vector<1x32xf32>
    %c7 = arith.constant 7 : index
    %c0_25 = arith.constant 0 : index
    %61 = vector.load %arg10[%c7, %c0_25] : memref<8x64xf32, #tpu.memory_space<vmem>>, vector<1x32xf32>
    tpu.vector_store %arg10[%c7, %c0_25], %60 {strides = array<i32>} : memref<8x64xf32, #tpu.memory_space<vmem>>, vector<1x32xf32>,
    %c1_i32_26 = arith.constant 1 : i32
    %62 = arith.cmpi sgt, %1, %c1_i32_26 : i32
    %63 = arith.extui %62 : i1 to i32
    %c0_i32_27 = arith.constant 0 : i32
    %64 = arith.cmpi ne, %63, %c0_i32_27 : i32
    scf.if %64 {
      %c8_i32_49 = arith.constant 8 : i32
      %88 = arith.addi %5, %c8_i32_49 : i32
      %c0_i32_50 = arith.constant 0 : i32
      %89 = arith.addi %88, %c0_i32_50 : i32
      %90 = arith.index_cast %89 : i32 to index
      %91 = memref.load %arg2[%90] : memref<32xi32, #tpu.memory_space<smem>>
      %92 = arith.index_cast %91 : i32 to index
      %c0_51 = arith.constant 0 : index
      %93 = vector.load %arg4[%92, %c0_51] : memref<8x32xf32, #tpu.memory_space<vmem>>, vector<1x32xf32>
      %c0_52 = arith.constant 0 : index
      %c32 = arith.constant 32 : index
      %94 = vector.load %arg10[%c0_52, %c32] : memref<8x64xf32, #tpu.memory_space<vmem>>, vector<1x32xf32>
      tpu.vector_store %arg10[%c0_52, %c32], %93 {strides = array<i32>} : memref<8x64xf32, #tpu.memory_space<vmem>>, vector<1x32xf32>,
      %c8_i32_53 = arith.constant 8 : i32
      %95 = arith.addi %5, %c8_i32_53 : i32
      %c1_i32_54 = arith.constant 1 : i32
      %96 = arith.addi %95, %c1_i32_54 : i32
      %97 = arith.index_cast %96 : i32 to index
      %98 = memref.load %arg2[%97] : memref<32xi32, #tpu.memory_space<smem>>
      %99 = arith.index_cast %98 : i32 to index
      %c0_55 = arith.constant 0 : index
      %100 = vector.load %arg4[%99, %c0_55] : memref<8x32xf32, #tpu.memory_space<vmem>>, vector<1x32xf32>
      %c1_56 = arith.constant 1 : index
      %c32_57 = arith.constant 32 : index
      %101 = vector.load %arg10[%c1_56, %c32_57] : memref<8x64xf32, #tpu.memory_space<vmem>>, vector<1x32xf32>
      tpu.vector_store %arg10[%c1_56, %c32_57], %100 {strides = array<i32>} : memref<8x64xf32, #tpu.memory_space<vmem>>, vector<1x32xf32>,
      %c8_i32_58 = arith.constant 8 : i32
      %102 = arith.addi %5, %c8_i32_58 : i32
      %c2_i32_59 = arith.constant 2 : i32
      %103 = arith.addi %102, %c2_i32_59 : i32
      %104 = arith.index_cast %103 : i32 to index
      %105 = memref.load %arg2[%104] : memref<32xi32, #tpu.memory_space<smem>>
      %106 = arith.index_cast %105 : i32 to index
      %c0_60 = arith.constant 0 : index
      %107 = vector.load %arg4[%106, %c0_60] : memref<8x32xf32, #tpu.memory_space<vmem>>, vector<1x32xf32>
      %c2_61 = arith.constant 2 : index
      %c32_62 = arith.constant 32 : index
      %108 = vector.load %arg10[%c2_61, %c32_62] : memref<8x64xf32, #tpu.memory_space<vmem>>, vector<1x32xf32>
      tpu.vector_store %arg10[%c2_61, %c32_62], %107 {strides = array<i32>} : memref<8x64xf32, #tpu.memory_space<vmem>>, vector<1x32xf32>,
      %c8_i32_63 = arith.constant 8 : i32
      %109 = arith.addi %5, %c8_i32_63 : i32
      %c3_i32_64 = arith.constant 3 : i32
      %110 = arith.addi %109, %c3_i32_64 : i32
      %111 = arith.index_cast %110 : i32 to index
      %112 = memref.load %arg2[%111] : memref<32xi32, #tpu.memory_space<smem>>
      %113 = arith.index_cast %112 : i32 to index
      %c0_65 = arith.constant 0 : index
      %114 = vector.load %arg4[%113, %c0_65] : memref<8x32xf32, #tpu.memory_space<vmem>>, vector<1x32xf32>
      %c3_66 = arith.constant 3 : index
      %c32_67 = arith.constant 32 : index
      %115 = vector.load %arg10[%c3_66, %c32_67] : memref<8x64xf32, #tpu.memory_space<vmem>>, vector<1x32xf32>
      tpu.vector_store %arg10[%c3_66, %c32_67], %114 {strides = array<i32>} : memref<8x64xf32, #tpu.memory_space<vmem>>, vector<1x32xf32>,
      %c8_i32_68 = arith.constant 8 : i32
      %116 = arith.addi %5, %c8_i32_68 : i32
      %c4_i32_69 = arith.constant 4 : i32
      %117 = arith.addi %116, %c4_i32_69 : i32
      %118 = arith.index_cast %117 : i32 to index
      %119 = memref.load %arg2[%118] : memref<32xi32, #tpu.memory_space<smem>>
      %120 = arith.index_cast %119 : i32 to index
      %c0_70 = arith.constant 0 : index
      %121 = vector.load %arg4[%120, %c0_70] : memref<8x32xf32, #tpu.memory_space<vmem>>, vector<1x32xf32>
      %c4_71 = arith.constant 4 : index
      %c32_72 = arith.constant 32 : index
      %122 = vector.load %arg10[%c4_71, %c32_72] : memref<8x64xf32, #tpu.memory_space<vmem>>, vector<1x32xf32>
      tpu.vector_store %arg10[%c4_71, %c32_72], %121 {strides = array<i32>} : memref<8x64xf32, #tpu.memory_space<vmem>>, vector<1x32xf32>,
      %c8_i32_73 = arith.constant 8 : i32
      %123 = arith.addi %5, %c8_i32_73 : i32
      %c5_i32_74 = arith.constant 5 : i32
      %124 = arith.addi %123, %c5_i32_74 : i32
      %125 = arith.index_cast %124 : i32 to index
      %126 = memref.load %arg2[%125] : memref<32xi32, #tpu.memory_space<smem>>
      %127 = arith.index_cast %126 : i32 to index
      %c0_75 = arith.constant 0 : index
      %128 = vector.load %arg4[%127, %c0_75] : memref<8x32xf32, #tpu.memory_space<vmem>>, vector<1x32xf32>
      %c5_76 = arith.constant 5 : index
      %c32_77 = arith.constant 32 : index
      %129 = vector.load %arg10[%c5_76, %c32_77] : memref<8x64xf32, #tpu.memory_space<vmem>>, vector<1x32xf32>
      tpu.vector_store %arg10[%c5_76, %c32_77], %128 {strides = array<i32>} : memref<8x64xf32, #tpu.memory_space<vmem>>, vector<1x32xf32>,
      %c8_i32_78 = arith.constant 8 : i32
      %130 = arith.addi %5, %c8_i32_78 : i32
      %c6_i32_79 = arith.constant 6 : i32
      %131 = arith.addi %130, %c6_i32_79 : i32
      %132 = arith.index_cast %131 : i32 to index
      %133 = memref.load %arg2[%132] : memref<32xi32, #tpu.memory_space<smem>>
      %134 = arith.index_cast %133 : i32 to index
      %c0_80 = arith.constant 0 : index
      %135 = vector.load %arg4[%134, %c0_80] : memref<8x32xf32, #tpu.memory_space<vmem>>, vector<1x32xf32>
      %c6_81 = arith.constant 6 : index
      %c32_82 = arith.constant 32 : index
      %136 = vector.load %arg10[%c6_81, %c32_82] : memref<8x64xf32, #tpu.memory_space<vmem>>, vector<1x32xf32>
      tpu.vector_store %arg10[%c6_81, %c32_82], %135 {strides = array<i32>} : memref<8x64xf32, #tpu.memory_space<vmem>>, vector<1x32xf32>,
      %c8_i32_83 = arith.constant 8 : i32
      %137 = arith.addi %5, %c8_i32_83 : i32
      %c7_i32_84 = arith.constant 7 : i32
      %138 = arith.addi %137, %c7_i32_84 : i32
      %139 = arith.index_cast %138 : i32 to index
      %140 = memref.load %arg2[%139] : memref<32xi32, #tpu.memory_space<smem>>
      %141 = arith.index_cast %140 : i32 to index
      %c0_85 = arith.constant 0 : index
      %142 = vector.load %arg4[%141, %c0_85] : memref<8x32xf32, #tpu.memory_space<vmem>>, vector<1x32xf32>
      %c7_86 = arith.constant 7 : index
      %c32_87 = arith.constant 32 : index
      %143 = vector.load %arg10[%c7_86, %c32_87] : memref<8x64xf32, #tpu.memory_space<vmem>>, vector<1x32xf32>
      tpu.vector_store %arg10[%c7_86, %c32_87], %142 {strides = array<i32>} : memref<8x64xf32, #tpu.memory_space<vmem>>, vector<1x32xf32>,
    } else {
    }
    %c1_i32_28 = arith.constant 1 : i32
    %65 = arith.cmpi sle, %1, %c1_i32_28 : i32
    %66 = arith.extui %65 : i1 to i32
    %c0_i32_29 = arith.constant 0 : i32
    %67 = arith.cmpi ne, %66, %c0_i32_29 : i32
    scf.if %67 {
      %cst_49 = arith.constant 0.000000e+00 : f32
      %88 = vector.broadcast %cst_49 : f32 to vector<8x32xf32>
      %c0_50 = arith.constant 0 : index
      %c32 = arith.constant 32 : index
      %89 = vector.load %arg10[%c0_50, %c32] : memref<8x64xf32, #tpu.memory_space<vmem>>, vector<8x32xf32>
      tpu.vector_store %arg10[%c0_50, %c32], %88 {strides = array<i32>} : memref<8x64xf32, #tpu.memory_space<vmem>>, vector<8x32xf32>,
    } else {
    }
    %c0_30 = arith.constant 0 : index
    %c0_31 = arith.constant 0 : index
    %68 = vector.load %arg10[%c0_30, %c0_31] : memref<8x64xf32, #tpu.memory_space<vmem>>, vector<8x64xf32>
    %c0_32 = arith.constant 0 : index
    %c0_33 = arith.constant 0 : index
    %c0_34 = arith.constant 0 : index
    %69 = vector.load %arg5[%c0_32, %c0_33, %c0_34] : memref<1x64x128xf32, #tpu.memory_space<vmem>>, vector<1x64x128xf32>
    %70 = vector.shape_cast %69 : vector<1x64x128xf32> to vector<64x128xf32>
    %cst = arith.constant dense<0.000000e+00> : vector<8x128xf32>
    %71 = tpu.matmul %68, %70, %cst {dimension_numbers = #tpu.dot_dimension_numbers<[1], [0], [0], [1], [0, 0, 1, 1], [], []>} : vector<8x64xf32>, vector<64x128xf32>, vector<8x128xf32> -> vector<8x128xf32>
    %c0_35 = arith.constant 0 : index
    %c0_36 = arith.constant 0 : index
    %c0_37 = arith.constant 0 : index
    %72 = vector.load %arg6[%c0_35, %c0_36, %c0_37] : memref<1x1x128xf32, #tpu.memory_space<vmem>>, vector<1x1x128xf32>
    %73 = vector.shape_cast %72 : vector<1x1x128xf32> to vector<1x128xf32>
    %74 = vector.broadcast %73 : vector<1x128xf32> to vector<8x128xf32>
    %75 = arith.addf %71, %74 : vector<8x128xf32>
    %cst_38 = arith.constant 0.000000e+00 : f32
    %76 = vector.broadcast %cst_38 : f32 to vector<8x128xf32>
    %77 = arith.maximumf %75, %76 : vector<8x128xf32>
    %c0_39 = arith.constant 0 : index
    %c0_40 = arith.constant 0 : index
    %c0_41 = arith.constant 0 : index
    %78 = vector.load %arg7[%c0_39, %c0_40, %c0_41] : memref<1x128x128xf32, #tpu.memory_space<vmem>>, vector<1x128x128xf32>
    %79 = vector.shape_cast %78 : vector<1x128x128xf32> to vector<128x128xf32>
    %cst_42 = arith.constant dense<0.000000e+00> : vector<8x128xf32>
    %80 = tpu.matmul %77, %79, %cst_42 {dimension_numbers = #tpu.dot_dimension_numbers<[1], [0], [0], [1], [0, 0, 1, 1], [], []>} : vector<8x128xf32>, vector<128x128xf32>, vector<8x128xf32> -> vector<8x128xf32>
    %c0_43 = arith.constant 0 : index
    %c0_44 = arith.constant 0 : index
    %c0_45 = arith.constant 0 : index
    %81 = vector.load %arg8[%c0_43, %c0_44, %c0_45] : memref<1x1x128xf32, #tpu.memory_space<vmem>>, vector<1x1x128xf32>
    %82 = vector.shape_cast %81 : vector<1x1x128xf32> to vector<1x128xf32>
    %83 = vector.broadcast %82 : vector<1x128xf32> to vector<8x128xf32>
    %84 = arith.addf %80, %83 : vector<8x128xf32>
    %c0_46 = arith.constant 0 : index
    %c0_47 = arith.constant 0 : index
    %c0_48 = arith.constant 0 : index
    %85 = vector.load %arg9[%c0_46, %c0_47, %c0_48] : memref<1x8x128xf32, #tpu.memory_space<vmem>>, vector<1x8x128xf32>
    %86 = vector.shape_cast %85 : vector<1x8x128xf32> to vector<8x128xf32>
    %87 = vector.shape_cast %84 : vector<8x128xf32> to vector<1x8x128xf32>
    tpu.vector_store %arg9[%c0_46, %c0_47, %c0_48], %87 {strides = array<i32>} : memref<1x8x128xf32, #tpu.memory_space<vmem>>, vector<1x8x128xf32>,
    return
  }
  func.func @transform_0(%arg0: i32, %arg1: i32, %arg2: memref<32xi32, #tpu.memory_space<smem>>, %arg3: memref<2xi32, #tpu.memory_space<smem>>) -> (i32, i32) {
    %c0_i32 = arith.constant 0 : i32
    %c0_i32_0 = arith.constant 0 : i32
    %c0_i32_1 = arith.constant 0 : i32
    return %c0_i32, %c0_i32_0 : i32, i32
  }
  func.func @transform_1(%arg0: i32, %arg1: i32, %arg2: memref<32xi32, #tpu.memory_space<smem>>, %arg3: memref<2xi32, #tpu.memory_space<smem>>) -> (i32, i32, i32) {
    %c0_i32 = arith.constant 0 : i32
    %c0_i32_0 = arith.constant 0 : i32
    %c0_i32_1 = arith.constant 0 : i32
    return %arg1, %c0_i32, %c0_i32_0 : i32, i32, i32
  }
  func.func @transform_2(%arg0: i32, %arg1: i32, %arg2: memref<32xi32, #tpu.memory_space<smem>>, %arg3: memref<2xi32, #tpu.memory_space<smem>>) -> (i32, i32, i32) {
    %c0_i32 = arith.constant 0 : i32
    %c0_i32_0 = arith.constant 0 : i32
    %c0_i32_1 = arith.constant 0 : i32
    return %arg1, %c0_i32, %c0_i32_0 : i32, i32, i32
  }
  func.func @transform_3(%arg0: i32, %arg1: i32, %arg2: memref<32xi32, #tpu.memory_space<smem>>, %arg3: memref<2xi32, #tpu.memory_space<smem>>) -> (i32, i32, i32) {
    %c0_i32 = arith.constant 0 : i32
    %c0_i32_0 = arith.constant 0 : i32
    %c0_i32_1 = arith.constant 0 : i32
    return %arg1, %c0_i32, %c0_i32_0 : i32, i32, i32
  }
  func.func @transform_4(%arg0: i32, %arg1: i32, %arg2: memref<32xi32, #tpu.memory_space<smem>>, %arg3: memref<2xi32, #tpu.memory_space<smem>>) -> (i32, i32, i32) {
    %c0_i32 = arith.constant 0 : i32
    %c0_i32_0 = arith.constant 0 : i32
    %c0_i32_1 = arith.constant 0 : i32
    return %arg1, %c0_i32, %c0_i32_0 : i32, i32, i32
  }
  func.func @transform_5(%arg0: i32, %arg1: i32, %arg2: memref<32xi32, #tpu.memory_space<smem>>, %arg3: memref<2xi32, #tpu.memory_space<smem>>) -> (i32, i32, i32) {
    %c0_i32 = arith.constant 0 : i32
    %c0_i32_0 = arith.constant 0 : i32
    return %arg1, %arg0, %c0_i32 : i32, i32, i32
  }
}

</mosaic_0001>

<bundles_post_ra>
// kernel: _fused_forward.1
= control target key start
LH: loop header
LB: loop body
LE: loop exit
PB: predicated region body
PF: predicated region fallthrough
CT: control target
= control target key end

     0   :  { %s1201_s24 = smov [#allocation4]   ;;  %s1570_s0 = inlined_call_operand.hbm [shape: s32[32], index: 0, kind: input, shape index: {}]   ;;  %s1571_s2 = inlined_call_operand.hbm [shape: f32[8,32], index: 2, kind: input, shape index: {}]   ;;  %s1572_s3 = inlined_call_operand.hbm [shape: f32[2,64,128], index: 3, kind: input, shape index: {}]   ;;  %s1573_s4 = inlined_call_operand.vmem [shape: f32[2,1,128], index: 4, kind: input, shape index: {}]   ;;  %s1574_s5 = inlined_call_operand.hbm [shape: f32[2,128,128], index: 5, kind: input, shape index: {}]   ;;  %s1575_s6 = inlined_call_operand.vmem [shape: f32[2,1,128], index: 6, kind: input, shape index: {}]   ;;  %s1576_s7 = inlined_call_operand.hbm [shape: f32[2,8,128], index: 7, kind: output, shape index: {}]   ;;  %s1577_s1 = inlined_call_operand.vmem [shape: s32[2], index: 1, kind: input, shape index: {}]  }
   0x1   :  { %1589 = sst [smem:[#allocation24_spill]] %s1571_s2  ;;  %s14_s29 = sshll.u32 %s1577_s1, 4  ;;  %s15_s29 = int_to_ptr.vmem [resolvable:$true] %s14_s29 }
   0x2   :  { %1590 = sst [smem:[#allocation25_spill]] %s1572_s3  ;;  %s1019_s30 = scalar_lea.vmem %s15_s29, 16 }
   0x3   :  { %1591 = sst [smem:[#allocation26_spill]] %s1574_s5  ;;  %p1020_p0 = scmp.ne.s32.totalorder %s15_s29, %s1019_s30 }
   0x4   :  { %13 = dma.hbm_to_smem %s1570_s0, 16, %s1201_s24, [#allocation3] }
   0x5   :  { %p1024_p1 = scmp.lt.s32.totalorder %s15_s29, %s15_s29  ;;  %p1025_p2 = scmp.lt.s32.totalorder %s1019_s30, %s1019_s30 }
   0x7   :  { %p1026_p3 = por %p1025_p2, %p1024_p1 }
   0x9   :  { %p1027_p4 = pnand %p1026_p3, %p1020_p0 }
   0xb   :  { %1030 = shalt.err (!%p1027_p4)  }
   0xc   :  { %s1202_s8 = smov [#allocation5]  }
   0xd   :  { %17 = dma.vmem_to_smem %s15_s29, 16, %s1202_s8, [#allocation3] }
   0xe   :  { %1163 = dma.done.wait [#allocation3], 32 }
   0xf   :  { %1164 = vsyncadd [#allocation3], 4294967264 }
  0x10   :  { %19 = sfence }
  0x11   :  { %20 = vsyncpa [#allocation7], 0 }
  0x12   :  { %21 = vsyncpa [#allocation10], 0 }
  0x13   :  { %23 = vsyncpa [#allocation10 + $0x1], 0 }
  0x14   :  { %24 = vsyncpa [#allocation8], 0 }
  0x15   :  { %26 = vsyncpa [#allocation8 + $0x1], 0  ;;  %s1259_s0 = smov 0   ;;  %s1261_s1 = smov 0  }
  0x16   :  { %s1263_s9 = smov 0   ;;  %s1265_s10 = smov 0  }
  0x17   :  { %s1267_s11 = smov 0   ;;  %s1269_s12 = smov 0  }
  0x18 LB: > { %1592 = sst [smem:[#allocation17_spill]] %s1183_s1  ;;  %s41_s13 = sadd.s32 1, %s1195_s11  ;;  %s1199_s12 = sphi %s1269_s12, %s32_s12   ;;  %s1195_s11 = sphi %s1267_s11, %s1625_s11   ;;  %s1191_s10 = sphi %s1265_s10, %s1624_s10   ;;  %s1187_s9 = sphi %s1263_s9, %s1623_s9   ;;  %s1183_s1 = sphi %s1261_s1, %s1622_s1   ;;  %s1179_s0 = sphi %s1259_s0, %s1621_s0  }
  0x19   : > { %1593 = sst [smem:[#allocation18_spill]] %s1187_s9  ;;  %s72_s14 = sadd.s32 1, %s1187_s9 }
  0x1a   : > { %1594 = sst [smem:[#allocation19_spill]] %s1195_s11  ;;  %p42_p5 = scmp.ge.s32.totalorder %s41_s13, 2 }
  0x1b   : > { %1595 = sst [smem:[#allocation20_spill]] %s1199_s12  ;;  %p79_p6 = scmp.ne.s32.totalorder %s1187_s9, %s1183_s1 }
  0x1c   : > { %p80_p7 = scmp.eq.s32.totalorder %s1199_s12, 0  ;;  %s1627_s13 = smov (%p42_p5, %s41_s13), 0 }
  0x1d   : > { %1596 = sst [smem:[#allocation21_spill]] %s1627_s13  ;;  %p951_p10 = scmp.lt.s32.totalorder %s1199_s12, 2 }
  0x1e   : > { %p81_p9 = por %p80_p7, %p79_p6  ;;  %s69_s15 = ssub.s32 %s1195_s11, %s1627_s13 }
  0x1f   : > { %s226_s16 = sand.u32 1, %s1199_s12   ;;  %p70_p11 = scmp.eq.s32.totalorder %s69_s15, 0 }
  0x20   : > { %s228_s17 = sand.u32 1, %s1187_s9   ;;  %s843_s18 = sshll.u32 %s1195_s11, 10 }
  0x21   : > { %s1307_s19 = scalar_select %p70_p11, %s1187_s9, %s72_s14  }
  0x22   : > { %s822_s20 = sshll.u32 %s228_s17, 6  ;;  %s1598_s3 = sld [smem:[#allocation25_spill]] }
  0x23   : > { %1597 = sst [smem:[#allocation22_spill]] %s1307_s19  ;;  %p1312_p12 = pnand %p951_p10, %p81_p9 }
  0x24   : > { %s230_s25 = scalar_lea.vmem [#allocation9], %s822_s20  ;;  %s825_s27 = sshll.u32 %s228_s17, 7 }
  0x25   : > { %s237_s26 = sshll.u32 %s230_s25, 4  ;;  %s1316_s28 = scalar_lea.sflag [#allocation10], %s226_s16  ;;  %s238_s26 = int_to_ptr.vmem [resolvable:$true] %s237_s26 }
  0x26   : > { %p1033_p13 = pneg %p1312_p12  ;;  %s1044_s29 = scalar_lea.vmem %s238_s26, 1024 }
  0x27   : > { %p1045_p0 = scmp.ne.s32.totalorder %s238_s26, %s1044_s29  ;;  %s1203_s30 = smov [#allocation9]  }
  0x28   : > { %s236_s23 = scalar_lea.hbm %s1598_s3, %s843_s18  ;;  %s1049_s8 = sshll.u32 %s1203_s30, 4  ;;  %s1050_s8 = int_to_ptr.vmem [resolvable:$false] %s1049_s8 }
  0x29   : > { %p1047_p1 = pnand %p1045_p0, %p1033_p13  ;;  %s1051_s14 = scalar_lea.vmem %s1050_s8, 2048 }
  0x2a   : > { %p1052_p3 = scmp.lt.s32.totalorder %s238_s26, %s1050_s8  ;;  %p1053_p4 = scmp.lt.s32.totalorder %s1051_s14, %s1044_s29 }
  0x2b   : > { %p1048_p2 = pneg %p1047_p1 }
  0x2c   : > { %p1054_p5 = por %p1053_p4, %p1052_p3 }
  0x2e   : > { %p1055_p7 = pnand %p1054_p5, %p1048_p2 }
  0x30   : > { %1058 = shalt.err (!%p1055_p7)
}
  0x31   : > { %s1578_s15 = smov 128   ;;  %s1579_s16 = smov 8  }
  0x32   : > { %942 = dma.hbm_to_vmem [thread:$0]  (!%p1312_p12), %s236_s23, 1024, %s238_s26, %s1316_s28, %s1578_s15, %s1578_s15, %s1579_s16  }
  0x33   : > { %s257_s17 = scalar_lea.vmem [#allocation11], %s825_s27  ;;  %s1330_s20 = sadd.s32 4294967295, %s1199_s12  }
  0x34   : > { %s264_s18 = sshll.u32 %s257_s17, 4  ;;  %s818_s21 = sadd.s32 4294967294, %s1199_s12   ;;  %s265_s18 = int_to_ptr.vmem [resolvable:$true] %s264_s18 }
  0x35   : > { %p85_p9 = scmp.ne.s32.totalorder %s1183_s1, %s1179_s0  ;;  %p1580_p10 = scmp.eq.s32.totalorder %s1330_s20, 0 }
  0x36   : > { %p189_p11 = scmp.eq.s32.totalorder %s1330_s20, 1  ;;  %p195_p0 = scmp.eq.s32.totalorder %s818_s21, 1 }
  0x37   : > { %p1339_p1 = por %p1580_p10, %p85_p9  ;;  %p819_p2 = scmp.ge.s32.totalorder %s1199_s12, 1 }
  0x38   : > { %p1347_p3 = por %p189_p11, %p79_p6  ;;  %p1351_p4 = por %p195_p0, %p85_p9 }
  0x39   : > { %p202_p5 = scmp.lt.s32.totalorder %s1199_s12, 3  ;;  %s844_s26 = sshll.u32 %s1195_s11, 11 }
  0x3a   : > { %s1601_s23 = scalar_select %p1347_p3, 1, 0 }
  0x3b   : > { %s1602_s25 = scalar_select %p1351_p4, 1, 0 }
  0x3c   : > { %p1357_p7 = pnand %p819_p2, %p202_p5  ;;  %s1206_s29 = smov [#allocation6]  }
  0x3d   : > { %1603 = sst [smem:[#allocation23_spill]] %s1602_s25  ;;  %s215_s30 = sshll.u32 %s1206_s29, 4  ;;  %s216_s30 = int_to_ptr.vmem [resolvable:$true] %s215_s30 }
  0x3e   : > { %s1605_s5 = sld [smem:[#allocation26_spill]]  ;;  %p935_p6 = pneg %p1357_p7 }
  0x3f   : > { %s1072_s21 = scalar_lea.vmem %s265_s18, 2048  ;;  %s1207_s15 = smov [#allocation11]  }
  0x40   : > { %p1073_p9 = scmp.ne.s32.totalorder %s265_s18, %s1072_s21  ;;  %s1077_s16 = sshll.u32 %s1207_s15, 4  ;;  %s1078_s16 = int_to_ptr.vmem [resolvable:$false] %s1077_s16 }
  0x41   : > { %s1079_s3 = scalar_lea.vmem %s1078_s16, 4096  ;;  %p1080_p2 = scmp.lt.s32.totalorder %s265_s18, %s1078_s16 }
  0x42   : > { %p1075_p11 = pnand %p1073_p9, %p1033_p13  ;;  %p1081_p5 = scmp.lt.s32.totalorder %s1079_s3, %s1072_s21 }
  0x44   : > { %s263_s17 = scalar_lea.hbm %s1605_s5, %s844_s26  ;;  %p1076_p0 = pneg %p1075_p11 }
  0x45   : > { %p1082_p8 = por %p1081_p5, %p1080_p2 }
  0x47   : > { %p1083_p10 = pnand %p1082_p8, %p1076_p0 }
  0x49   : > { %1086 = shalt.err (!%p1083_p10)
}
  0x4a   : > { %s1606_s26 = smov 8   ;;  %s1607_s29 = smov 128  }
  0x4b   : > { %945 = dma.hbm_to_vmem [thread:$0]  (!%p1312_p12), %s263_s17, 2048, %s265_s18, %s1316_s28, %s1607_s29, %s1607_s29, %s1606_s26  }
  0x4c   : > { %p1608_p13 = scmp.eq.s32.totalorder %s1330_s20, 0  ;;  %s1098_s15 = scalar_lea.vmem %s216_s30, 128 }
  0x4d   : > { %p1099_p4 = scmp.ne.s32.totalorder %s216_s30, %s1098_s15  ;;  %p1106_p10 = scmp.lt.s32.totalorder %s216_s30, %s216_s30 }
  0x4e   : > { %p936_p9 = pnand %p935_p6, %p1608_p13  ;;  %p1107_p0 = scmp.lt.s32.totalorder %s1098_s15, %s1098_s15 }
  0x50   : > { %p1089_p11 = pneg %p936_p9  ;;  %p1108_p5 = por %p1107_p0, %p1106_p10 }
  0x52   : > { %p1101_p2 = pnand %p1099_p4, %p1089_p11 }
  0x54   : > { %p1102_p8 = pneg %p1101_p2 }
  0x56   : > { %p1109_p3 = pnand %p1108_p5, %p1102_p8 }
  0x58   : > { %1112 = shalt.err (!%p1109_p3)
}
  0x59   : > { %s1609_s2 = sld [smem:[#allocation24_spill]]  ;;  %p1610_p12 = scmp.eq.s32.totalorder (!%p1357_p7), %s1330_s20, 0 }
  0x5b   : > { %282 = sbr.rel (%p1357_p7) target bundleno = 688 (0x2b0), region = 40 }
  0x5f   : > { %938 = dma.hbm_to_vmem [thread:$0]  (!%p936_p9), %s1609_s2, 128, %s216_s30, [#allocation7]  }
  0x60   : > { %1166 = dma.done.wait (%p1610_p12), [#allocation7], 128   ;;  %p1611_p6 = pmov %p1610_p12 }
  0x61   : > { %s288_s28 = sand.u32 1, %s1330_s20   ;;  %s1391_s16 = sand.u32 1, %s1183_s1  }
  0x62   : > { %1168 = vsyncadd (%p1611_p6), [#allocation7], 4294967168  ;;  %s830_s18 = sshll.u32 %s1391_s16, 6  ;;  %s289_s8 = scalar_lea.sflag [#allocation10], %s288_s28 }
  0x63   : > { %s1394_s14 = scalar_lea.vmem [#allocation9], %s830_s18 }
  0x64   : > { %1170 = dma.done.wait (%p1339_p1), %s289_s8, 3072  }
  0x65   : > { %1172 = vsyncadd (%p1339_p1), %s289_s8, 4294964224  ;;  %s1403_s30 = sld [smem:[#allocation5 + %s1191_s10]]  ;;  %p339_p3 = scmp.lt.s32.totalorder %s1191_s10, 1  ;;  %vm352_vm0 = vcmask 253952  }
  0x66   : > { %s1407_s17 = sshll.u32 %s1191_s10, 4 }
  0x67   : > { %s1410_s22 = scalar_select %p339_p3, %s1191_s10, 1 }
  0x68   : > { %s349_s21 = sld [smem:[#allocation4 + %s1407_s17]]  ;;  %s354_s26 = sadd.s32 1, %s1407_s17 }
  0x69   : > { %s355_s8 = sld [smem:[#allocation4 + %s354_s26]]  ;;  %s359_s20 = sadd.s32 2, %s1407_s17 }
  0x6a   : > { %s360_s27 = sld [smem:[#allocation4 + %s359_s20]]  ;;  %s364_s2 = sadd.s32 3, %s1407_s17 }
  0x6b   : > { %s365_s5 = sld [smem:[#allocation4 + %s364_s2]]  ;;  %s369_s13 = sadd.s32 4, %s1407_s17 }
  0x6c   : > { %s370_s11 = sld [smem:[#allocation4 + %s369_s13]]  ;;  %s374_s19 = sadd.s32 5, %s1407_s17 }
  0x6d   : > { %s375_s9 = sld [smem:[#allocation4 + %s374_s19]]  ;;  %s379_s12 = sadd.s32 6, %s1407_s17 }
  0x6e   : > { %s350_s1 = scalar_lea.vmem [#allocation6], %s349_s21  ;;  %s384_s29 = sadd.s32 7, %s1407_s17 }
  0x6f   : > { %v351_v0 = vld [vmem:[%s350_s1] sm:$0x1]  ;;  %s380_s15 = sld [smem:[#allocation4 + %s379_s12]]  ;;  %s356_s3 = scalar_lea.vmem [#allocation6], %s355_s8 }
  0x70   : > { %353 = vst.msk [vmem:[#allocation2] sm:$0x1] %vm352_vm0, %v351_v0  ;;  %v357_v1 = vld [vmem:[%s356_s3] sm:$0x1]  ;;  %s385_s24 = sld [smem:[#allocation4 + %s384_s29]]  ;;  %s361_s20 = scalar_lea.vmem [#allocation6], %s360_s27 }
  0x71   : > { %358 = vst.msk [vmem:[#allocation2 + $0x1] sm:$0x1] %vm352_vm0, %v357_v1  ;;  %v362_v2 = vld [vmem:[%s361_s20] sm:$0x1]  ;;  %s366_s2 = scalar_lea.vmem [#allocation6], %s365_s5  ;;  %s1612_s5 = sshll.u32 %s1391_s16, 7 }
  0x72   : > { %363 = vst.msk [vmem:[#allocation2 + $0x2] sm:$0x1] %vm352_vm0, %v362_v2  ;;  %v367_v3 = vld [vmem:[%s366_s2] sm:$0x1]  ;;  %s371_s1 = scalar_lea.vmem [#allocation6], %s370_s11  ;;  %s1438_s27 = scalar_lea.vmem [#allocation11], %s1612_s5 }
  0x73   : > { %368 = vst.msk [vmem:[#allocation2 + $0x3] sm:$0x1] %vm352_vm0, %v367_v3  ;;  %v372_v4 = vld [vmem:[%s371_s1] sm:$0x1]  ;;  %s376_s12 = scalar_lea.vmem [#allocation6], %s375_s9  ;;  %s1613_s21 = sshll.u32 %s1391_s16, 3 }
  0x74   : > { %373 = vst.msk [vmem:[#allocation2 + $0x4] sm:$0x1] %vm352_vm0, %v372_v4  ;;  %v377_v5 = vld [vmem:[%s376_s12] sm:$0x1]  ;;  %s1442_s11 = scalar_lea.vmem [#allocation12], %s1613_s21  ;;  %p834_p1 = scmp.le.s32.totalorder %s1403_s30, 1 }
  0x75   : > { %378 = vst.msk [vmem:[#allocation2 + $0x5] sm:$0x1] %vm352_vm0, %v377_v5  ;;  %s381_s13 = scalar_lea.vmem [#allocation6], %s380_s15  ;;  %s412_s9 = sadd.s32 (!%p834_p1), 10, %s1407_s17 }
  0x76   : > { %v382_v6 = vld [vmem:[%s381_s13] sm:$0x1]  ;;  %s386_s19 = scalar_lea.vmem [#allocation6], %s385_s24  ;;  %392 = sbr.rel (%p834_p1) target bundleno = 257 (0x101), region = 56 }
  0x77   : > { %383 = vst.msk [vmem:[#allocation2 + $0x6] sm:$0x1] %vm352_vm0, %v382_v6  ;;  %v387_v7 = vld [vmem:[%s386_s19] sm:$0x1]  ;;  %s413_s26 = sld [smem:[#allocation4 + %s412_s9]] (!%p834_p1)  ;;  %s393_s3 = sadd.s32 (!%p834_p1), 8, %s1407_s17 }
  0x78   : > { %388 = vst.msk [vmem:[#allocation2 + $0x7] sm:$0x1] %vm352_vm0, %v387_v7  ;;  %s394_s28 = sld [smem:[#allocation4 + %s393_s3]] (!%p834_p1)  ;;  %s421_s8 = sadd.s32 (!%p834_p1), 11, %s1407_s17 }
  0x79   : > { %s422_s29 = sld [smem:[#allocation4 + %s421_s8]] (!%p834_p1)  ;;  %s403_s15 = sadd.s32 (!%p834_p1), 9, %s1407_s17 }
  0x7a   : > { %s404_s24 = sld [smem:[#allocation4 + %s403_s15]] (!%p834_p1)  ;;  %s439_s20 = sadd.s32 (!%p834_p1), 13, %s1407_s17 }
  0x7b   : > { %s440_s2 = sld [smem:[#allocation4 + %s439_s20]]  ;;  %s430_s1 = sadd.s32 12, %s1407_s17  ;;  %vm401_vm1 = vcmask 516352  }
  0x7c   : > { %s431_s12 = sld [smem:[#allocation4 + %s430_s1]]  ;;  %s457_s13 = sadd.s32 15, %s1407_s17 }
  0x7d   : > { %s458_s19 = sld [smem:[#allocation4 + %s457_s13]]  ;;  %s414_s5 = scalar_lea.vmem [#allocation6], %s413_s26 }
  0x7e   : > { %v415_v8 = vld [vmem:[%s414_s5] sm:$0x1]  ;;  %s448_s21 = sadd.s32 14, %s1407_s17  ;;  %s1208_s18 = smov 32  }
  0x7f   : > { %417 = vrot.lane.b32.xlu1 %v415_v8, %s1208_s18  ;;  %s395_s25 = scalar_lea.vmem [#allocation6], %s394_s28  ;;  %s449_s9 = sld [smem:[#allocation4 + %s448_s21]] }
  0x80   : > { %v396_v9 = vld [vmem:[%s395_s25] sm:$0x1]  ;;  %s423_s3 = scalar_lea.vmem [#allocation6], %s422_s29  ;;  %s405_s8 = scalar_lea.vmem [#allocation6], %s404_s24 }
  0x81   : > { %398 = vrot.lane.b32.xlu0 %v396_v9, %s1208_s18  ;;  %v424_v10 = vld [vmem:[%s423_s3] sm:$0x1]  ;;  %s441_s15 = scalar_lea.vmem [#allocation6], %s440_s2 }
  0x82   : > { %v406_v11 = vld [vmem:[%s405_s8] sm:$0x1]  ;;  %s432_s20 = scalar_lea.vmem [#allocation6], %s431_s12 }
  0x83   : > { %426 = vrot.lane.b32.xlu1 %v424_v10, %s1208_s18  ;;  %v442_v12 = vld [vmem:[%s441_s15] sm:$0x1]  ;;  %s459_s26 = scalar_lea.vmem [#allocation6], %s458_s19 }
  0x84   : > { %v433_v13 = vld [vmem:[%s432_s20] sm:$0x1] }
  0x85   : > { %408 = vrot.lane.b32.xlu0 %v406_v11, %s1208_s18  ;;  %v460_v14 = vld [vmem:[%s459_s26] sm:$0x1]  ;;  %s450_s17 = scalar_lea.vmem [#allocation6], %s449_s9 }
  0x86   : > { %v451_v15 = vld [vmem:[%s450_s17] sm:$0x1] }
  0x87   : > { %444 = vrot.lane.b32.xlu1 %v442_v12, %s1208_s18 }
  0x89   : > { %435 = vrot.lane.b32.xlu0 %v433_v13, %s1208_s18 }
  0x8b   : > { %462 = vrot.lane.b32.xlu1 %v460_v14, %s1208_s18 }
  0x8d   : > { %453 = vrot.lane.b32.xlu0 %v451_v15, %s1208_s18 }
  0xf1   : > { %v418_v16 = vpop.permute.xlu1 %417 }
  0xf2   : > { %420 = vst.msk [vmem:[#allocation2 + $0x2] sm:$0x1] %vm401_vm1, %v418_v16 }
  0xf3   : > { %v399_v17 = vpop.permute.xlu0 %398 }
  0xf4   : > { %402 = vst.msk [vmem:[#allocation2] sm:$0x1] %vm401_vm1, %v399_v17 }
  0xf5   : > { %v427_v18 = vpop.permute.xlu1 %426 }
  0xf6   : > { %429 = vst.msk [vmem:[#allocation2 + $0x3] sm:$0x1] %vm401_vm1, %v427_v18 }
  0xf7   : > { %v409_v19 = vpop.permute.xlu0 %408 }
  0xf8   : > { %411 = vst.msk [vmem:[#allocation2 + $0x1] sm:$0x1] %vm401_vm1, %v409_v19 }
  0xf9   : > { %v445_v20 = vpop.permute.xlu1 %444 }
  0xfa   : > { %447 = vst.msk [vmem:[#allocation2 + $0x5] sm:$0x1] %vm401_vm1, %v445_v20 }
  0xfb   : > { %v436_v21 = vpop.permute.xlu0 %435 }
  0xfc   : > { %438 = vst.msk [vmem:[#allocation2 + $0x4] sm:$0x1] %vm401_vm1, %v436_v21 }
  0xfd   : > { %v463_v22 = vpop.permute.xlu1 %462 }
  0xfe   : > { %465 = vst.msk [vmem:[#allocation2 + $0x7] sm:$0x1] %vm401_vm1, %v463_v22 }
  0xff   : > { %v454_v23 = vpop.permute.xlu0 %453 }
 0x100   : > { %456 = vst.msk [vmem:[#allocation2 + $0x6] sm:$0x1] %vm401_vm1, %v454_v23 }
 0x101 PF: > { %p835_p4 = scmp.gt.s32.totalorder %s1403_s30, 1 }
 0x103   : > { %469 = sbr.rel (%p835_p4) target bundleno = 266 (0x10a), region = 60 }
 0x108   : > { %vm470_vm2 = vcmask 523520   ;;  %v1209_v24 = vmov 0.0  }
 0x109   : > { %471 = vst.msk [vmem:[#allocation2] sm:$0xff] %vm470_vm2, %v1209_v24 }
 0x10a PF: > { %v480_v25 = vld [vmem:[%s1394_s14 + $0x38] sm:$0xff]  ;;  %v1210_v26 = vmov 0.0   ;;  %v479_v27 = vld [vmem:[%s1394_s14 + $0x30] sm:$0xff]  ;;  %vm1211_vm3 = vmmov 0   ;;  %v478_v28 = vld [vmem:[%s1394_s14 + $0x28] sm:$0xff]  ;;  %vm488_vm4 = vcmask 523264   ;;  %s1614_s30 = scalar_lea.vmem %s1573_s4, %s1410_s22  ;;  %s1615_s29 = scalar_lea.vmem %s1575_s6, %s1410_s22 }
 0x10b   : > { %871 = vmatprep.subr.mxu0 %v1210_v26  ;;  %887 = vmatprep.mubr.msk.f32.mxu0 %vm1211_vm3, %v1210_v26  ;;  %v578_v29 = vld [vmem:[%s1438_s27 + $0x78] sm:$0xff]  ;;  %v577_v30 = vld [vmem:[%s1438_s27 + $0x70] sm:$0xff]  ;;  %v477_v31 = vld [vmem:[%s1394_s14 + $0x20] sm:$0xff]  ;;  %s672_s24 = sshll.u32 %s1442_s11, 4  ;;  %s658_s13 = scalar_lea.sflag [#allocation8], %s1391_s16  ;;  %s673_s24 = int_to_ptr.vmem [resolvable:$true] %s672_s24 }
 0x10c   : > { %872 = vmatpush3.msra.mxu0 %v480_v25  ;;  %890 = vmatprep.subr.mxu1 %v1210_v26  ;;  %v576_v32 = vld [vmem:[%s1438_s27 + $0x68] sm:$0xff]  ;;  %v476_v33 = vld [vmem:[%s1394_s14 + $0x18] sm:$0xff]  ;;  %v575_v34 = vld [vmem:[%s1438_s27 + $0x60] sm:$0xff]  ;;  %s1113_s19 = scalar_lea.vmem %s673_s24, 128  ;;  %p1616_p13 = scmp.ne.s32.totalorder %s1601_s23, 0 }
 0x10d   : > { %873 = vmatprep.subr.mxu0 %v1210_v26  ;;  %922 = vmatprep.mubr.msk.f32.mxu1 %vm1211_vm3, %v1210_v26  ;;  %v475_v35 = vld [vmem:[%s1394_s14 + $0x10] sm:$0xff]  ;;  %v574_v36 = vld [vmem:[%s1438_s27 + $0x58] sm:$0xff]  ;;  %v474_v37 = vld [vmem:[%s1394_s14 + $0x8] sm:$0xff]  ;;  %p1114_p7 = scmp.ne.s32.totalorder %s673_s24, %s1113_s19  ;;  %s1212_s22 = smov [#allocation12]  }
 0x10e   : > { %874 = vmatpush3.msra.mxu0 %v479_v27  ;;  %891 = vmatpush3.msra.mxu1 %v578_v29  ;;  %v573_v38 = vld [vmem:[%s1438_s27 + $0x50] sm:$0xff]  ;;  %v473_v39 = vld [vmem:[%s1394_s14] sm:$0xff]  ;;  %v572_v40 = vld [vmem:[%s1438_s27 + $0x48] sm:$0xff]  ;;  %s1117_s5 = sshll.u32 %s1212_s22, 4  ;;  %s1118_s5 = int_to_ptr.vmem [resolvable:$false] %s1117_s5 }
 0x10f   : > { %875 = vmatprep.subr.mxu0 %v1210_v26  ;;  %892 = vmatprep.subr.mxu1 %v1210_v26  ;;  %v571_v42 = vld [vmem:[%s1438_s27 + $0x40] sm:$0xff]  ;;  %v570_v43 = vld [vmem:[%s1438_s27 + $0x38] sm:$0xff]  ;;  %v569_v44 = vld [vmem:[%s1438_s27 + $0x30] sm:$0xff]  ;;  %p1115_p9 = pnand %p1114_p7, %p1616_p13  ;;  %p1120_p2 = scmp.lt.s32.totalorder %s673_s24, %s1118_s5 }
 0x110   : > { %876 = vmatpush3.msra.mxu0 %v478_v28  ;;  %893 = vmatpush3.msra.mxu1 %v577_v30  ;;  %v472_v41 = vld [vmem:[#allocation2] sm:$0xff]  ;;  %v568_v45 = vld [vmem:[%s1438_s27 + $0x28] sm:$0xff]  ;;  %v567_v46 = vld [vmem:[%s1438_s27 + $0x20] sm:$0xff] }
 0x111   : > { %877 = vmatprep.subr.mxu0 %v1210_v26  ;;  %894 = vmatprep.subr.mxu1 %v1210_v26  ;;  %v566_v47 = vld [vmem:[%s1438_s27 + $0x18] sm:$0xff]  ;;  %v565_v48 = vld [vmem:[%s1438_s27 + $0x10] sm:$0xff]  ;;  %v564_v49 = vld [vmem:[%s1438_s27 + $0x8] sm:$0xff]  ;;  %p1116_p11 = pneg %p1115_p9 }
 0x112   : > { %878 = vmatpush3.msra.mxu0 %v477_v31  ;;  %895 = vmatpush3.msra.mxu1 %v576_v32  ;;  %v563_v50 = vld [vmem:[%s1438_s27] sm:$0xff]  ;;  %v836_v51 = vld [vmem:[%s1614_s30] ss:$0 sm:$0xff]  ;;  %s840_s27 = sshll.u32 %s1191_s10, 7  ;;  %s1119_s10 = scalar_lea.vmem %s1118_s5, 256 }
 0x113   : > { %879 = vmatprep.subr.mxu0 %v1210_v26  ;;  %896 = vmatprep.subr.mxu1 %v1210_v26  ;;  %v838_v56 = vld [vmem:[%s1615_s29] ss:$0 sm:$0xff]  ;;  %s1527_s12 = scalar_lea.hbm %s1576_s7, %s840_s27  ;;  %p1121_p8 = scmp.lt.s32.totalorder %s1119_s10, %s1113_s19 }
 0x114   : > { %880 = vmatpush3.msra.mxu0 %v476_v33  ;;  %897 = vmatpush3.msra.mxu1 %v575_v34 }
 0x115   : > { %881 = vmatprep.subr.mxu0 %v1210_v26  ;;  %898 = vmatprep.subr.mxu1 %v1210_v26  ;;  %p1122_p10 = por %p1121_p8, %p1120_p2 }
 0x116   : > { %882 = vmatpush3.msra.mxu0 %v475_v35  ;;  %899 = vmatpush3.msra.mxu1 %v574_v36 }
 0x117   : > { %883 = vmatprep.subr.mxu0 %v1210_v26  ;;  %900 = vmatprep.subr.mxu1 %v1210_v26  ;;  %p1123_p0 = pnand %p1122_p10, %p1116_p11 }
 0x118   : > { %884 = vmatpush3.msra.mxu0 %v474_v37  ;;  %901 = vmatpush3.msra.mxu1 %v573_v38 }
 0x119   : > { %885 = vmatprep.subr.mxu0 %v1210_v26  ;;  %902 = vmatprep.subr.mxu1 %v1210_v26 }
 0x11a   : > { %886 = vmatpush3.msra.mxu0 %v473_v39  ;;  %903 = vmatpush3.msra.mxu1 %v572_v40 }
 0x11b   : > { %888 = vmatmul.mubr.msk.f32.vlgmr.msra.gmra.mxu0 %vm488_vm4, %v472_v41  ;;  %904 = vmatprep.subr.mxu1 %v1210_v26 }
 0x11c   : > { %905 = vmatpush3.msra.mxu1 %v571_v42 }
 0x11d   : > { %906 = vmatprep.subr.mxu1 %v1210_v26 }
 0x11e   : > { %907 = vmatpush3.msra.mxu1 %v570_v43 }
 0x11f   : > { %908 = vmatprep.subr.mxu1 %v1210_v26 }
 0x120   : > { %909 = vmatpush3.msra.mxu1 %v569_v44 }
 0x121   : > { %910 = vmatprep.subr.mxu1 %v1210_v26 }
 0x122   : > { %911 = vmatpush3.msra.mxu1 %v568_v45 }
 0x123   : > { %912 = vmatprep.subr.mxu1 %v1210_v26 }
 0x124   : > { %913 = vmatpush3.msra.mxu1 %v567_v46 }
 0x125   : > { %914 = vmatprep.subr.mxu1 %v1210_v26 }
 0x126   : > { %915 = vmatpush3.msra.mxu1 %v566_v47 }
 0x127   : > { %916 = vmatprep.subr.mxu1 %v1210_v26 }
 0x128   : > { %917 = vmatpush3.msra.mxu1 %v565_v48 }
 0x129   : > { %918 = vmatprep.subr.mxu1 %v1210_v26 }
 0x12a   : > { %919 = vmatpush3.msra.mxu1 %v564_v49 }
 0x12b   : > { %920 = vmatprep.subr.mxu1 %v1210_v26 }
 0x12c   : > { %921 = vmatpush3.msra.mxu1 %v563_v50 }
 0x1db   : > { %v558_v52 = vpop.f32.mrf.mxu0 }
 0x1dc   : > { %v559_v53 = vadd.f32 %v836_v51, %v558_v52 }
 0x1dd   : > { %v889_v54 = vpop.f32.mrf.mxu0 }
 0x1de   : > { %v562_v55 = vmax.f32 %v559_v53, 0.0 }
 0x1e0   : > { %923 = vmatmul.mubr.f32.vlgmr.msra.gmra.mxu1 %v562_v55 }
 0x2a0   : > { %v652_v57 = vpop.f32.mrf.mxu1 }
 0x2a1   : > { %v653_v58 = vadd.f32 %v838_v56, %v652_v57 }
 0x2a2   : > { %v924_v59 = vpop.f32.mrf.mxu1 }
 0x2a3   : > { %656 = vst [vmem:[%s1442_s11] sm:$0xff] %v653_v58 }
 0x2a4   : > { %1126 = shalt.err (!%p1123_p0)
}
 0x2a5   : > { %s1127_s11 = scalar_lea.hbm %s1527_s12, 128  ;;  %s1131_s9 = scalar_lea.hbm %s1576_s7, 256 }
 0x2a6   : > { %p1128_p5 = scmp.ne.s32.totalorder %s1527_s12, %s1127_s11  ;;  %p1132_p3 = scmp.lt.s32.totalorder %s1527_s12, %s1576_s7 }
 0x2a7   : > { %p1133_p1 = scmp.lt.s32.totalorder %s1131_s9, %s1127_s11 }
 0x2a8   : > { %p1129_p12 = pnand %p1128_p5, %p1616_p13 }
 0x2a9   : > { %p1134_p4 = por %p1133_p1, %p1132_p3 }
 0x2aa   : > { %p1130_p6 = pneg %p1129_p12 }
 0x2ac   : > { %p1135_p7 = pnand %p1134_p4, %p1130_p6 }
 0x2ae   : > { %1138 = shalt.err (!%p1135_p7)
}
 0x2af   : > { %933 = dma.vmem_to_hbm [thread:$0]  (%p1616_p13), %s673_s24, 128, %s1527_s12, %s658_s13  }
 0x2b0 PF: > { %s1617_s15 = sld [smem:[#allocation23_spill]]  ;;  %s684_s26 = sand.u32 1, %s1179_s0  }
 0x2b1   : > { %s1618_s20 = sld [smem:[#allocation20_spill]]  ;;  %s685_s17 = scalar_lea.sflag [#allocation8], %s684_s26 }
 0x2b6   : > { %p1619_p9 = scmp.ne.s32.totalorder %s1617_s15, 0 }
 0x2b7   : > { %p1620_p11 = scmp.ge.s32.totalorder %s1618_s20, 2 }
 0x2b9   : > { %p947_p2 = pnand %p1620_p11, %p1619_p9 }
 0x2bb   : > { %p948_p8 = pneg %p947_p2 }
 0x2bd   : > { %1174 = dma.done.wait (%p948_p8), %s685_s17, 128  }
 0x2be   : > { %1176 = vsyncadd (%p948_p8), %s685_s17, 4294967168  ;;  %s32_s12 = sadd.s32 1, %s1618_s20   ;;  %s1621_s0 = sld [smem:[#allocation17_spill]] }
 0x2bf   : > { %p29_p10 = scmp.ge.s32.totalorder %s32_s12, 4   ;;  %s1622_s1 = sld [smem:[#allocation18_spill]] }
 0x2c0   : > { %s1623_s9 = sld [smem:[#allocation22_spill]] }
 0x2c1   : > { %s1624_s10 = sld [smem:[#allocation19_spill]]  ;;  %31 = sbr.rel (!%p29_p10) target bundleno = 24 (0x18), region = 131 }
 0x2c2   : > { %s1625_s11 = sld [smem:[#allocation21_spill]] }
 0x2c6   :  { %690 = vsyncpa [#allocation7], 1 }
 0x2c7   :  { %692 = vsyncpa [#allocation7 + $0x1], 1 }
 0x2c8   :  { %693 = vsyncpa [#allocation10], 1 }
 0x2c9   :  { %695 = vsyncpa [#allocation10 + $0x1], 1 }
 0x2ca   :  { %696 = vsyncpa [#allocation8], 1 }
 0x2cb   :  { %698 = vsyncpa [#allocation8 + $0x1], 1 }

</bundles_post_ra>
